<compile_context>
chip_gen: v7x
topology: tpu7x:2x2x1
jax: 0.10.0
libtpu: 0.0.40
codegen_flags: <defaults>
</compile_context>

<pallas_src>
import jax
import jax.numpy as jnp
from jax.experimental import pallas as pl
from jax.experimental.pallas import tpu as pltpu


def _round_up(n, m):
    return ((n + m - 1) // m) * m


def _kalah_kernel(x_ref, w1_ref, b1_ref, w2_ref, b2_ref, w34_ref, b34_ref,
                  out_ref):
    """One batch tile: fc1+relu, fc2+relu, fused heads, log_softmax + tanh."""
    x = x_ref[...]

    # fc1 + relu (bf16 MXU operands, f32 accumulation)
    h = jnp.dot(x, w1_ref[...], preferred_element_type=jnp.float32) + b1_ref[...]
    h = jnp.maximum(h, 0.0).astype(jnp.bfloat16)

    # fc2 + relu
    h = jnp.dot(h, w2_ref[...], preferred_element_type=jnp.float32) + b2_ref[...]
    h = jnp.maximum(h, 0.0).astype(jnp.bfloat16)

    # fused heads: columns [0, action_n) = policy logits, column action_n = value
    y = jnp.dot(h, w34_ref[...], preferred_element_type=jnp.float32) + b34_ref[...]

    out_w = y.shape[-1]
    action_n = out_w - 1
    col = jax.lax.broadcasted_iota(jnp.int32, y.shape, 1)
    is_pi = col < action_n

    # masked, max-shifted log_softmax over the policy columns only
    pi_masked = jnp.where(is_pi, y, jnp.float32(-1e30))
    m = jnp.max(pi_masked, axis=-1, keepdims=True)
    e = jnp.where(is_pi, jnp.exp(pi_masked - m), 0.0)
    lse = jnp.log(jnp.sum(e, axis=-1, keepdims=True))
    log_pi = (y - m) - lse

    # single lane-merged store: [log_pi | tanh(v)]
    out_ref[...] = jnp.where(is_pi, log_pi, jnp.tanh(y))


def kalah_net_forward(x, params, *, block_rows=1024):
    """x: (B, holes_n) float32. Returns (log_pi (B, action_n), v (B, 1)) in f32."""
    B, holes_n = x.shape
    action_n = params["w3"].shape[1]
    out_w = action_n + 1

    # Fuse the two heads into one (28, action_n + 1) weight / bias.
    w34 = jnp.concatenate([params["w3"], params["w4"]], axis=1)
    b34 = jnp.concatenate([params["b3"], params["b4"]], axis=1)

    # HBM-bound kernel: bf16 operands halve input bytes; biases stay f32.
    x_bf = x.astype(jnp.bfloat16)
    w1 = params["w1"].astype(jnp.bfloat16)
    w2 = params["w2"].astype(jnp.bfloat16)
    w34 = w34.astype(jnp.bfloat16)
    b1, b2 = params["b1"], params["b2"]

    # Batch tile (multiple of 8 sublanes); pad B so every tile is full.
    tb = min(block_rows, _round_up(max(B, 1), 8))
    b_pad = _round_up(B, tb)
    if b_pad != B:
        x_bf = jnp.pad(x_bf, ((0, b_pad - B), (0, 0)))
    grid = (b_pad // tb,)

    batch_spec = lambda width: pl.BlockSpec((tb, width), lambda i: (i, 0))
    pinned = lambda a: pl.BlockSpec(a.shape, lambda i: (0, 0))

    cost = pl.CostEstimate(
        flops=2 * b_pad * (holes_n * 28 + 28 * 28 + 28 * out_w),
        transcendentals=b_pad * (out_w + 2),
        bytes_accessed=(x_bf.size * 2 + b_pad * out_w * 4
                        + (w1.size + w2.size + w34.size) * 2
                        + (b1.size + b2.size + b34.size) * 4),
    )

    out = pl.pallas_call(
        _kalah_kernel,
        out_shape=jax.ShapeDtypeStruct((b_pad, out_w), jnp.float32),
        grid=grid,
        in_specs=[batch_spec(holes_n),
                  pinned(w1), pinned(b1),
                  pinned(w2), pinned(b2),
                  pinned(w34), pinned(b34)],
        out_specs=batch_spec(out_w),
        compiler_params=pltpu.CompilerParams(
            dimension_semantics=("parallel",)),
        cost_estimate=cost,
    )(x_bf, w1, b1, w2, b2, w34, b34)

    return out[:B, :action_n], out[:B, action_n:]


def init_params(key, holes):
    """Deterministic PyTorch-style uniform(-1/sqrt(fan_in), 1/sqrt(fan_in)) init."""
    action_n = holes + 1
    holes_n = (holes + 1) * 2
    dims = [(holes_n, 28), (28, 28), (28, action_n), (28, 1)]
    params = {}
    for i, (fan_in, fan_out) in enumerate(dims, start=1):
        key, kw, kb = jax.random.split(key, 3)
        bound = 1.0 / jnp.sqrt(float(fan_in))
        params[f"w{i}"] = jax.random.uniform(
            kw, (fan_in, fan_out), jnp.float32, minval=-bound, maxval=bound)
        # bias kept 2D (1, out) so it broadcasts cleanly on the lane axis
        params[f"b{i}"] = jax.random.uniform(
            kb, (1, fan_out), jnp.float32, minval=-bound, maxval=bound)
    return params


if __name__ == "__main__":
    holes = 6                      # standard Kalah board -> action_n=7, holes_n=14
    batch = 2

    key = jax.random.PRNGKey(0)
    key, kx = jax.random.split(key)
    params = init_params(key, holes)

    x = jax.random.normal(kx, (batch, (holes + 1) * 2), dtype=jnp.float32)

    log_pi, v = kalah_net_forward(x, params)
    jax.block_until_ready((log_pi, v))

    # pure-JAX f32 reference (loose tolerance: kernel uses bf16 MXU operands)
    def ref_forward(xx, p):
        h = jnp.maximum(xx @ p["w1"] + p["b1"], 0.0)
        h = jnp.maximum(h @ p["w2"] + p["b2"], 0.0)
        pi = h @ p["w3"] + p["b3"]
        vv = h @ p["w4"] + p["b4"]
        return jax.nn.log_softmax(pi, axis=1), jnp.tanh(vv)

    ref_log_pi, ref_v = ref_forward(x, params)

    prob_sums = jnp.sum(jnp.exp(log_pi), axis=1)
    assert jnp.allclose(prob_sums, 1.0, atol=1e-3), prob_sums
    assert bool(jnp.all(jnp.abs(v) <= 1.0))
    assert jnp.allclose(log_pi, ref_log_pi, atol=5e-2), (log_pi, ref_log_pi)
    assert jnp.allclose(v, ref_v, atol=5e-2), (v, ref_v)

    print("KERNEL_OK")
</pallas_src>

<mosaic_0001>
module attributes {stable_mosaic.version = 11 : i64} {
  func.func @_kalah_kernel(%arg0: i32, %arg1: memref<8x14xbf16, #tpu.memory_space<vmem>>, %arg2: memref<14x28xbf16, #tpu.memory_space<vmem>>, %arg3: memref<1x28xf32, #tpu.memory_space<vmem>>, %arg4: memref<28x28xbf16, #tpu.memory_space<vmem>>, %arg5: memref<1x28xf32, #tpu.memory_space<vmem>>, %arg6: memref<28x8xbf16, #tpu.memory_space<vmem>>, %arg7: memref<1x8xf32, #tpu.memory_space<vmem>>, %arg8: memref<8x8xf32, #tpu.memory_space<vmem>>) attributes {dimension_semantics = [#tpu.dimension_semantics<parallel>], iteration_bounds = array<i64: 1>, scalar_prefetch = 0 : i64, scratch_operands = 0 : i64, tpu.core_type = #tpu.core_type<tc>, window_params = [{transform_indices = @transform_0, window_bounds = array<i64: 8, 14>}, {pipeline_mode = #tpu.pipeline_mode<synchronous>, transform_indices = @transform_1, window_bounds = array<i64: 14, 28>}, {pipeline_mode = #tpu.pipeline_mode<synchronous>, transform_indices = @transform_2, window_bounds = array<i64: 1, 28>}, {pipeline_mode = #tpu.pipeline_mode<synchronous>, transform_indices = @transform_3, window_bounds = array<i64: 28, 28>}, {pipeline_mode = #tpu.pipeline_mode<synchronous>, transform_indices = @transform_4, window_bounds = array<i64: 1, 28>}, {pipeline_mode = #tpu.pipeline_mode<synchronous>, transform_indices = @transform_5, window_bounds = array<i64: 28, 8>}, {pipeline_mode = #tpu.pipeline_mode<synchronous>, transform_indices = @transform_6, window_bounds = array<i64: 1, 8>}, {transform_indices = @transform_7, window_bounds = array<i64: 8, 8>}]} {
    %c0 = arith.constant 0 : index
    %c0_0 = arith.constant 0 : index
    %0 = vector.load %arg1[%c0, %c0_0] : memref<8x14xbf16, #tpu.memory_space<vmem>>, vector<8x14xbf16>
    %c0_1 = arith.constant 0 : index
    %c0_2 = arith.constant 0 : index
    %1 = vector.load %arg2[%c0_1, %c0_2] : memref<14x28xbf16, #tpu.memory_space<vmem>>, vector<14x28xbf16>
    %cst = arith.constant dense<0.000000e+00> : vector<8x28xf32>
    %2 = tpu.matmul %0, %1, %cst {dimension_numbers = #tpu.dot_dimension_numbers<[1], [0], [0], [1], [0, 0, 1, 1], [], []>} : vector<8x14xbf16>, vector<14x28xbf16>, vector<8x28xf32> -> vector<8x28xf32>
    %c0_3 = arith.constant 0 : index
    %c0_4 = arith.constant 0 : index
    %3 = vector.load %arg3[%c0_3, %c0_4] : memref<1x28xf32, #tpu.memory_space<vmem>>, vector<1x28xf32>
    %4 = vector.broadcast %3 : vector<1x28xf32> to vector<8x28xf32>
    %5 = arith.addf %2, %4 : vector<8x28xf32>
    %cst_5 = arith.constant 0.000000e+00 : f32
    %6 = vector.broadcast %cst_5 : f32 to vector<8x28xf32>
    %7 = arith.maximumf %5, %6 : vector<8x28xf32>
    %8 = arith.truncf %7 : vector<8x28xf32> to vector<8x28xbf16>
    %c0_6 = arith.constant 0 : index
    %c0_7 = arith.constant 0 : index
    %9 = vector.load %arg4[%c0_6, %c0_7] : memref<28x28xbf16, #tpu.memory_space<vmem>>, vector<28x28xbf16>
    %cst_8 = arith.constant dense<0.000000e+00> : vector<8x28xf32>
    %10 = tpu.matmul %8, %9, %cst_8 {dimension_numbers = #tpu.dot_dimension_numbers<[1], [0], [0], [1], [0, 0, 1, 1], [], []>} : vector<8x28xbf16>, vector<28x28xbf16>, vector<8x28xf32> -> vector<8x28xf32>
    %c0_9 = arith.constant 0 : index
    %c0_10 = arith.constant 0 : index
    %11 = vector.load %arg5[%c0_9, %c0_10] : memref<1x28xf32, #tpu.memory_space<vmem>>, vector<1x28xf32>
    %12 = vector.broadcast %11 : vector<1x28xf32> to vector<8x28xf32>
    %13 = arith.addf %10, %12 : vector<8x28xf32>
    %cst_11 = arith.constant 0.000000e+00 : f32
    %14 = vector.broadcast %cst_11 : f32 to vector<8x28xf32>
    %15 = arith.maximumf %13, %14 : vector<8x28xf32>
    %16 = arith.truncf %15 : vector<8x28xf32> to vector<8x28xbf16>
    %c0_12 = arith.constant 0 : index
    %c0_13 = arith.constant 0 : index
    %17 = vector.load %arg6[%c0_12, %c0_13] : memref<28x8xbf16, #tpu.memory_space<vmem>>, vector<28x8xbf16>
    %cst_14 = arith.constant dense<0.000000e+00> : vector<8x8xf32>
    %18 = tpu.matmul %16, %17, %cst_14 {dimension_numbers = #tpu.dot_dimension_numbers<[1], [0], [0], [1], [0, 0, 1, 1], [], []>} : vector<8x28xbf16>, vector<28x8xbf16>, vector<8x8xf32> -> vector<8x8xf32>
    %c0_15 = arith.constant 0 : index
    %c0_16 = arith.constant 0 : index
    %19 = vector.load %arg7[%c0_15, %c0_16] : memref<1x8xf32, #tpu.memory_space<vmem>>, vector<1x8xf32>
    %20 = vector.broadcast %19 : vector<1x8xf32> to vector<8x8xf32>
    %21 = arith.addf %18, %20 : vector<8x8xf32>
    %22 = tpu.iota {dimensions = array<i32: 1>} : vector<8x8xi32>
    %c7_i32 = arith.constant 7 : i32
    %23 = vector.broadcast %c7_i32 : i32 to vector<8x8xi32>
    %24 = arith.cmpi slt, %22, %23 : vector<8x8xi32>
    %cst_17 = arith.constant -1.000000e+30 : f32
    %25 = vector.broadcast %cst_17 : f32 to vector<8x8xf32>
    %26 = arith.select %24, %21, %25 : vector<8x8xi1>, vector<8x8xf32>
    %cst_18 = arith.constant dense<0xFF800000> : vector<8xf32>
    %27 = vector.multi_reduction <maximumf>, %26, %cst_18 [1] : vector<8x8xf32> to vector<8xf32>
    %28 = vector.shape_cast %27 : vector<8xf32> to vector<8x1xf32>
    %29 = vector.broadcast %28 : vector<8x1xf32> to vector<8x8xf32>
    %30 = arith.subf %26, %29 : vector<8x8xf32>
    %31 = math.exp %30 : vector<8x8xf32>
    %cst_19 = arith.constant 0.000000e+00 : f32
    %32 = vector.broadcast %cst_19 : f32 to vector<8x8xf32>
    %33 = arith.select %24, %31, %32 : vector<8x8xi1>, vector<8x8xf32>
    %cst_20 = arith.constant dense<0.000000e+00> : vector<8xf32>
    %34 = vector.multi_reduction <add>, %33, %cst_20 [1] : vector<8x8xf32> to vector<8xf32>
    %35 = vector.shape_cast %34 : vector<8xf32> to vector<8x1xf32>
    %36 = math.log %35 : vector<8x1xf32>
    %37 = vector.broadcast %28 : vector<8x1xf32> to vector<8x8xf32>
    %38 = arith.subf %21, %37 : vector<8x8xf32>
    %39 = vector.broadcast %36 : vector<8x1xf32> to vector<8x8xf32>
    %40 = arith.subf %38, %39 : vector<8x8xf32>
    %41 = math.tanh %21 : vector<8x8xf32>
    %42 = arith.select %24, %40, %41 : vector<8x8xi1>, vector<8x8xf32>
    %c0_21 = arith.constant 0 : index
    %c0_22 = arith.constant 0 : index
    %43 = vector.load %arg8[%c0_21, %c0_22] : memref<8x8xf32, #tpu.memory_space<vmem>>, vector<8x8xf32>
    tpu.vector_store %arg8[%c0_21, %c0_22], %42 {strides = array<i32>} : memref<8x8xf32, #tpu.memory_space<vmem>>, vector<8x8xf32>,
    return
  }
  func.func @transform_0(%arg0: i32) -> (i32, i32) {
    %c0_i32 = arith.constant 0 : i32
    %c0_i32_0 = arith.constant 0 : i32
    return %arg0, %c0_i32 : i32, i32
  }
  func.func @transform_1(%arg0: i32) -> (i32, i32) {
    %c0_i32 = arith.constant 0 : i32
    %c0_i32_0 = arith.constant 0 : i32
    %c0_i32_1 = arith.constant 0 : i32
    return %c0_i32, %c0_i32_0 : i32, i32
  }
  func.func @transform_2(%arg0: i32) -> (i32, i32) {
    %c0_i32 = arith.constant 0 : i32
    %c0_i32_0 = arith.constant 0 : i32
    %c0_i32_1 = arith.constant 0 : i32
    return %c0_i32, %c0_i32_0 : i32, i32
  }
  func.func @transform_3(%arg0: i32) -> (i32, i32) {
    %c0_i32 = arith.constant 0 : i32
    %c0_i32_0 = arith.constant 0 : i32
    %c0_i32_1 = arith.constant 0 : i32
    return %c0_i32, %c0_i32_0 : i32, i32
  }
  func.func @transform_4(%arg0: i32) -> (i32, i32) {
    %c0_i32 = arith.constant 0 : i32
    %c0_i32_0 = arith.constant 0 : i32
    %c0_i32_1 = arith.constant 0 : i32
    return %c0_i32, %c0_i32_0 : i32, i32
  }
  func.func @transform_5(%arg0: i32) -> (i32, i32) {
    %c0_i32 = arith.constant 0 : i32
    %c0_i32_0 = arith.constant 0 : i32
    %c0_i32_1 = arith.constant 0 : i32
    return %c0_i32, %c0_i32_0 : i32, i32
  }
  func.func @transform_6(%arg0: i32) -> (i32, i32) {
    %c0_i32 = arith.constant 0 : i32
    %c0_i32_0 = arith.constant 0 : i32
    %c0_i32_1 = arith.constant 0 : i32
    return %c0_i32, %c0_i32_0 : i32, i32
  }
  func.func @transform_7(%arg0: i32) -> (i32, i32) {
    %c0_i32 = arith.constant 0 : i32
    %c0_i32_0 = arith.constant 0 : i32
    return %arg0, %c0_i32 : i32, i32
  }
}

</mosaic_0001>

<bundles_post_ra>
// kernel: tpu_custom_call.1
= control target key start
LH: loop header
LB: loop body
LE: loop exit
PB: predicated region body
PF: predicated region fallthrough
CT: control target
= control target key end

     0   :  { %vm47_vm0 = vcmask 1046528   ;;  %v348_v0 = vmov 0.0   ;;  %vm349_vm1 = vmmov 0   ;;  %vm43_vm2 = vcmask 113664   ;;  %s438_s0 = inlined_call_operand.vmem [shape: bf16[8,14], index: 0, kind: input, shape index: {}]   ;;  %s439_s1 = inlined_call_operand.vmem [shape: bf16[14,28], index: 1, kind: input, shape index: {}]   ;;  %s440_s2 = inlined_call_operand.vmem [shape: f32[1,28], index: 2, kind: input, shape index: {}]   ;;  %s441_s3 = inlined_call_operand.vmem [shape: bf16[28,28], index: 3, kind: input, shape index: {}]   ;;  %s442_s4 = inlined_call_operand.vmem [shape: f32[1,28], index: 4, kind: input, shape index: {}]   ;;  %s443_s5 = inlined_call_operand.vmem [shape: bf16[28,8], index: 5, kind: input, shape index: {}]   ;;  %s444_s6 = inlined_call_operand.vmem [shape: f32[1,8], index: 6, kind: input, shape index: {}]   ;;  %s445_s7 = inlined_call_operand.hbm [shape: f32[8,8], index: 7, kind: output, shape index: {}]  }
   0x1   :  { %288 = vmatprep.subr.bf16.mxu0 %v348_v0  ;;  %v313_v1 = vld [vmem:[%s439_s1] sm:$0x7f]   ;;  %294 = vmatprep.subr.bf16.mxu1 %v348_v0 }
   0x2   :  { %290 = vmatprep.mubr.msk.bf16.mxu0 %vm349_vm1, %v348_v0  ;;  %v28_v2 = vld [vmem:[%s438_s0] sm:$0xf]  ;;  %298 = vmatprep.mubr.msk.bf16.mxu1 %vm349_vm1, %v348_v0  ;;  %v49_v3 = vsel %vm47_vm0, %v313_v1, 0 }
   0x3   :  { %289 = vmatpush3.bf16.msra.mxu0 %v49_v3 }
   0x4   :  { %302 = vmatprep.subr.bf16.mxu0 %v348_v0 }
   0x5   :  { %12 = vsyncpa [#allocation3], 0  ;;  %v314_v4 = vld [vmem:[%s441_s3] sm:$0xff]   ;;  %v315_v5 = vld [vmem:[%s441_s3 + $0x8] sm:$0x3f]   ;;  %vm119_vm3 = vcmask 1045504   ;;  %v233_v26 = vlaneseq }
   0x6   :  { %291 = vmatmul.mubr.msk.bf16.vlgmr.msra.gmra.mrb[0].mxu0 %vm43_vm2, %v28_v2  ;;  %295 = vmatpush3.bf16.msra.mxu1 %v314_v4  ;;  %v121_v6 = vsel %vm119_vm3, %v315_v5, 0  ;;  %v316_v7 = vld [vmem:[%s443_s5] sm:$0xff]   ;;  %vm115_vm4 = vcmask 228352   ;;  %v317_v16 = vld [vmem:[%s443_s5 + $0x8] sm:$0x3f]   ;;  %vm237_vm6 = vcmask 64512  }
   0x7   :  { %306 = vmatprep.mubr.msk.bf16.mxu0 %vm349_vm1, %v348_v0  ;;  %296 = vmatprep.subr.bf16.mxu1 %v348_v0  ;;  %v269_v8 = vld [vmem:[%s440_s2] ss:$0 sm:$0xff]  ;;  %v191_v17 = vsel %vm119_vm3, %v317_v16, 0  ;;  %v234_v27 = vand.u32 127, %v233_v26 }
   0x8   :  { %303 = vmatpush3.bf16.msra.mxu0 %v316_v7  ;;  %v272_v18 = vld [vmem:[%s442_s4] ss:$0 sm:$0xff]  ;;  %s350_s4 = smov [#allocation2]  }
   0x9   :  { %304 = vmatprep.subr.bf16.mxu0 %v348_v0  ;;  %v276_v28 = vld [vmem:[%s444_s6] ss:$0 sm:$0xff]  ;;  %vm235_vm5 = vcmp.lt.s32.totalorder %v234_v27, 7  ;;  %s261_s5 = sshll.u32 %s350_s4, 4  ;;  %s262_s5 = int_to_ptr.vmem [resolvable:$true] %s261_s5 }
   0xa   :  { %297 = vmatpush3.bf16.msra.mxu1 %v121_v6  ;;  %s324_s6 = scalar_lea.vmem %s262_s5, 128  ;;  %p329_p1 = scmp.lt.s32.totalorder %s262_s5, %s262_s5 }
   0xb   :  { %p325_p0 = scmp.ne.s32.totalorder %s262_s5, %s324_s6  ;;  %p330_p2 = scmp.lt.s32.totalorder %s324_s6, %s324_s6 }
   0xc   :  { %305 = vmatpush3.bf16.msra.mxu0 %v191_v17 }
   0xd   :  { %p331_p3 = por %p330_p2, %p329_p1 }
   0xf   :  { %p332_p4 = pnand %p331_p3, %p325_p0 }
  0xd9   :  { %v85_v9 = vpop.f32.mrb[0].mxu0 }
  0xda   :  { %v86_v10 = vadd.f32 %v269_v8, %v85_v9  ;;  %v292_v11 = vpop.f32.mrb[1].mxu0 }
  0xdb   :  { %v88_v12 = vpop.f32.mrb[2].mxu0 }
  0xdc   :  { %v91_v13 = vmax.f32 %v86_v10, 0.0  ;;  %v293_v14 = vpop.f32.mrb[3].mxu0 }
  0xde   :  { %v92_v15 = vpack.c.bf16 %v91_v13, %v91_v13 }
  0xe0   :  { %299 = vmatmul.mubr.msk.bf16.vlgmr.msra.gmra.mrb[0].mxu1 %vm115_vm4, %v92_v15 }
 0x1b3   :  { %v157_v19 = vpop.f32.mrb[0].mxu1 }
 0x1b4   :  { %v158_v20 = vadd.f32 %v272_v18, %v157_v19  ;;  %v300_v21 = vpop.f32.mrb[1].mxu1 }
 0x1b5   :  { %v160_v22 = vpop.f32.mrb[2].mxu1 }
 0x1b6   :  { %v163_v23 = vmax.f32 %v158_v20, 0.0  ;;  %v301_v24 = vpop.f32.mrb[3].mxu1 }
 0x1b8   :  { %v164_v25 = vpack.c.bf16 %v163_v23, %v163_v23 }
 0x1ba   :  { %307 = vmatmul.mubr.msk.bf16.vlgmr.msra.gmra.mrb[4].mxu0 %vm115_vm4, %v164_v25 }
 0x28d   :  { %v227_v29 = vpop.f32.mrb[4].mxu0 }
 0x28e   :  { %v228_v30 = vadd.f32 %v276_v28, %v227_v29  ;;  %v308_v31 = vpop.f32.mrb[5].mxu0 }
 0x28f   :  { %v230_v32 = vpop.f32.mrb[6].mxu0 }
 0x290   :  { %v309_v33 = vpop.f32.mrb[7].mxu0  ;;  %v236_v34 = vsel %vm235_vm5, %v228_v30, -1e+30 }
 0x291   :  { %v238_v35 = vsel %vm237_vm6, %v236_v34, -inf }
 0x292   :  { %239 = vmax.xlane.f32.xlu0 %v238_v35 }
 0x31f   :  { %v240_v36 = vpop.xlane.xlu0 %239 }
 0x320   :  { %v241_v37 = vsub.f32 %v236_v34, %v240_v36  ;;  %v250_v44 = vsub.f32 %v228_v30, %v240_v36 }
 0x322   :  { %v242_v38 = vmul.f32 1.442695, %v241_v37 }
 0x324   :  { %318 = vpow2.f32 %v242_v38 }
 0x32e   :  { %v319_v39 = vpop.eup %318 }
 0x32f   :  { %v244_v40 = vsel %vm235_vm5, %v319_v39, 0.0 }
 0x330   :  { %v245_v41 = vsel %vm237_vm6, %v244_v40, 0.0 }
 0x331   :  { %246 = vadd.xlane.f32.xlu0 %v245_v41 }
 0x3be   :  { %v247_v42 = vpop.xlane.xlu0 %246 }
 0x3bf   :  { %320 = vlog2.f32 %v247_v42 }
 0x3c0   :  { %322 = vtanh.f32 %v228_v30 }
 0x3c9   :  { %v321_v43 = vpop.eup %320 }
 0x3ca   :  { %v249_v45 = vmul.f32 0.6931472, %v321_v43  ;;  %v323_v47 = vpop.eup %322 }
 0x3cc   :  { %v251_v46 = vsub.f32 %v250_v44, %v249_v45 }
 0x3ce   :  { %v253_v48 = vsel %vm235_vm5, %v251_v46, %v323_v47 }
 0x3cf   :  { %254 = vst.msk [vmem:[#allocation2] sm:$0xff] %vm237_vm6, %v253_v48 }
 0x3d0   :  { %335 = shalt.err (!%p332_p4)
}
 0x3d1   :  { %s336_s17 = scalar_lea.hbm %s445_s7, 128 }
 0x3d2   :  { %p337_p5 = scmp.ne.s32.totalorder %s445_s7, %s336_s17  ;;  %p340_p6 = scmp.lt.u32.totalorder %s336_s17, %s445_s7 }
 0x3d4   :  { %p342_p7 = pnand %p340_p6, %p337_p5 }
 0x3d6   :  { %345 = shalt.err (!%p342_p7)
}
 0x3d7   :  { %264 = dma.vmem_to_hbm [thread:$0]  %s262_s5, 128, %s445_s7, [#allocation3]  }
 0x3d8   :  { %346 = dma.done.wait [#allocation3], 128  }
 0x3d9   :  { %347 = vsyncadd [#allocation3], 4294967168 }
 0x3da   :  { %268 = vsyncpa [#allocation3], 1 }

</bundles_post_ra>
